<compile_context>
chip_gen: v5e
topology: v5e:2x2
jax: 0.10.0
libtpu: 0.0.40
codegen_flags: <defaults>
</compile_context>

<pallas_src>
import jax
import jax.numpy as jnp
from jax.experimental import pallas as pl
from jax.experimental.pallas import tpu as pltpu


def _vonmises_kernel(params_ref, trig_ref, out_ref):
    """Compute one (TN, TM) output tile.

    params_ref: (TN, 5) cols = [R0, Rmax-R0, kappa*cos(2θ0), kappa*sin(2θ0), -kappa]
    trig_ref  : (2, TM)  rows = [cos(2θ), sin(2θ)]
    out_ref   : (TN, TM)
    """
    # Static Ref slices: zero-cost views, load only the (TN, 1) column needed.
    r0 = params_ref[:, 0:1]
    dr = params_ref[:, 1:2]          # Rmax - R0
    a = params_ref[:, 2:3]           # kappa * cos(2*theta0)
    b = params_ref[:, 3:4]           # kappa * sin(2*theta0)
    c = params_ref[:, 4:5]           # -kappa

    cos2t = trig_ref[0:1, :]         # (1, TM)
    sin2t = trig_ref[1:2, :]

    # kappa*(cos(2*(θ-θ0)) - 1) == a*cos(2θ) + b*sin(2θ) + c   (VPU only)
    arg = a * cos2t + b * sin2t + c                  # (TN, TM)
    out_ref[...] = (r0 + dr * jnp.exp(arg)).astype(out_ref.dtype)


def _ceil_to(x, mult):
    return -(-x // mult) * mult


def neural_von_mises(theta0, log_r0, log_rmax, log_kappa, theta, *,
                     tm=1024, tn_max=512, out_dtype=jnp.float32,
                     min_split_bytes=2 << 20):
    """theta0: (N,1) or scalar-like; log_* : (N,1); theta: (M,). Returns (N, M)."""
    n = log_r0.shape[0]
    m = theta.shape[0]

    # ---- Validate / round user tile parameters to (8,128)-legal values.
    tm = max(128, (int(tm) // 128) * 128)
    tn_max = max(8, (int(tn_max) // 8) * 8)

    # ---- Hoisted O(N) parameter preprocessing (once per call, not per tile).
    r0 = jnp.exp(jnp.reshape(log_r0, (n,)).astype(jnp.float32))
    rmax = jnp.exp(jnp.reshape(log_rmax, (n,)).astype(jnp.float32))
    kappa = jnp.exp(jnp.reshape(log_kappa, (n,)).astype(jnp.float32))
    theta0_v = jnp.broadcast_to(
        jnp.reshape(theta0, (-1,)).astype(jnp.float32), (n,))  # handles scalar theta0
    two_t0 = 2.0 * theta0_v
    params = jnp.stack(
        [r0, rmax - r0, kappa * jnp.cos(two_t0), kappa * jnp.sin(two_t0), -kappa],
        axis=1)                                                # (N, 5) packed

    # ---- Hoisted O(M) trig preprocessing.
    two_theta = 2.0 * jnp.reshape(theta, (m,)).astype(jnp.float32)
    trig = jnp.stack([jnp.cos(two_theta), jnp.sin(two_theta)], axis=0)  # (2, M)

    # ---- Tile selection: full-dim blocks when they fit, else (8,128)-aligned
    #      tiles with ragged edges masked by Mosaic (no wrapper padding).
    tn_eff = n if n <= tn_max else tn_max
    tm_eff = m if m <= tm else tm

    # v7x: guarantee >= 2 "parallel" blocks for non-tiny problems so both
    # TensorCores get work (no-op on v5e/v6e which have a single TC).
    out_itemsize = jnp.dtype(out_dtype).itemsize
    if (pl.cdiv(n, tn_eff) * pl.cdiv(m, tm_eff) == 1
            and n * m * out_itemsize > min_split_bytes):
        if m >= 256:
            tm_eff = _ceil_to(pl.cdiv(m, 2), 128)
        elif n >= 16:
            tn_eff = _ceil_to(pl.cdiv(n, 2), 8)

    grid = (pl.cdiv(n, tn_eff), pl.cdiv(m, tm_eff))

    # ---- VMEM budget from the actual working set (double-buffered blocks),
    #      modest floor for compiler scratch, capped well under v7x's 64 MiB.
    out_block_bytes = tn_eff * tm_eff * out_itemsize
    in_block_bytes = tn_eff * 5 * 4 + 2 * tm_eff * 4
    est = 2 * (out_block_bytes + in_block_bytes)
    vmem_limit = int(min(max(est + (2 << 20), 8 << 20), 40 << 20))

    out = pl.pallas_call(
        _vonmises_kernel,
        out_shape=jax.ShapeDtypeStruct((n, m), out_dtype),
        grid_spec=pltpu.PrefetchScalarGridSpec(
            num_scalar_prefetch=0,
            grid=grid,
            in_specs=[
                pl.BlockSpec((tn_eff, 5), lambda i, j: (i, 0)),     # packed params
                pl.BlockSpec((2, tm_eff), lambda i, j: (0, j)),     # [cos2θ; sin2θ]
            ],
            out_specs=pl.BlockSpec((tn_eff, tm_eff), lambda i, j: (i, j)),
        ),
        compiler_params=pltpu.CompilerParams(
            dimension_semantics=("parallel", "parallel"),
            vmem_limit_bytes=vmem_limit,
        ),
    )(params, trig)

    return out


def _reference(theta0, log_r0, log_rmax, log_kappa, theta_row):
    r0 = jnp.exp(log_r0)
    rmax = jnp.exp(log_rmax)
    kappa = jnp.exp(log_kappa)
    return r0 + (rmax - r0) * jnp.exp(
        kappa * (jnp.cos(2.0 * (theta_row - theta0)) - 1.0))


if __name__ == "__main__":
    key = jax.random.PRNGKey(0)
    k0, k1, k2, k3, k4, k5 = jax.random.split(key, 6)

    # ---- Case 1: aligned small shapes (single full-array block).
    N1, M1 = 8, 128
    theta0_1 = jax.random.uniform(k0, (N1,), jnp.float32, -jnp.pi, jnp.pi).reshape(N1, 1)
    log_r0_1 = (jax.random.normal(k1, (N1,), jnp.float32) * 0.1).reshape(N1, 1)
    log_rmax_1 = (jax.random.normal(k2, (N1,), jnp.float32) * 0.1 + 1.0).reshape(N1, 1)
    log_kappa_1 = (jax.random.normal(k3, (N1,), jnp.float32) * 0.1).reshape(N1, 1)
    theta_1 = jax.random.uniform(k4, (M1,), jnp.float32, -jnp.pi, jnp.pi)

    out1 = jax.block_until_ready(
        neural_von_mises(theta0_1, log_r0_1, log_rmax_1, log_kappa_1, theta_1))
    ref1 = _reference(theta0_1, log_r0_1, log_rmax_1, log_kappa_1,
                      theta_1.reshape(1, M1))
    assert out1.shape == (N1, M1)
    assert jnp.allclose(out1, ref1, atol=1e-5, rtol=1e-4)

    # ---- Case 2: non-aligned N / M -> ragged multi-block grid along M,
    #      unpadded (N, M) output with masked edge stores.
    N2, M2 = 20, 2500
    theta0_2 = jax.random.uniform(k5, (N2,), jnp.float32, -jnp.pi, jnp.pi).reshape(N2, 1)
    log_r0_2 = (jax.random.normal(k1, (N2,), jnp.float32) * 0.1).reshape(N2, 1)
    log_rmax_2 = (jax.random.normal(k2, (N2,), jnp.float32) * 0.1 + 1.0).reshape(N2, 1)
    log_kappa_2 = (jax.random.normal(k3, (N2,), jnp.float32) * 0.1).reshape(N2, 1)
    theta_2 = jax.random.uniform(k4, (M2,), jnp.float32, -jnp.pi, jnp.pi)

    out2 = jax.block_until_ready(
        neural_von_mises(theta0_2, log_r0_2, log_rmax_2, log_kappa_2, theta_2))
    ref2 = _reference(theta0_2, log_r0_2, log_rmax_2, log_kappa_2,
                      theta_2.reshape(1, M2))
    assert out2.shape == (N2, M2)
    assert jnp.allclose(out2, ref2, atol=1e-5, rtol=1e-4)

    # ---- Case 3: scalar theta0 parameter (module's numel()==1 branch) with
    #      tiny non-aligned full-dim blocks.
    N3, M3 = 3, 257
    theta0_3 = jax.random.uniform(k0, (1,), jnp.float32, -jnp.pi, jnp.pi)   # scalar param
    log_r0_3 = (jax.random.normal(k1, (N3,), jnp.float32) * 0.1).reshape(N3, 1)
    log_rmax_3 = (jax.random.normal(k2, (N3,), jnp.float32) * 0.1 + 1.0).reshape(N3, 1)
    log_kappa_3 = (jax.random.normal(k3, (N3,), jnp.float32) * 0.1).reshape(N3, 1)
    theta_3 = jax.random.uniform(k4, (M3,), jnp.float32, -jnp.pi, jnp.pi)

    out3 = jax.block_until_ready(
        neural_von_mises(theta0_3, log_r0_3, log_rmax_3, log_kappa_3, theta_3))
    ref3 = _reference(theta0_3.reshape(()), log_r0_3, log_rmax_3, log_kappa_3,
                      theta_3.reshape(1, M3))
    assert out3.shape == (N3, M3)
    assert jnp.allclose(out3, ref3, atol=1e-5, rtol=1e-4)

    print("KERNEL_OK")
</pallas_src>

<mosaic_0001>
module attributes {stable_mosaic.version = 11 : i64} {
  func.func @_vonmises_kernel(%arg0: i32, %arg1: i32, %arg2: memref<8x5xf32, #tpu.memory_space<vmem>>, %arg3: memref<2x128xf32, #tpu.memory_space<vmem>>, %arg4: memref<8x128xf32, #tpu.memory_space<vmem>>) attributes {dimension_semantics = [#tpu.dimension_semantics<parallel>, #tpu.dimension_semantics<parallel>], iteration_bounds = array<i64: 1, 1>, scalar_prefetch = 0 : i64, scratch_operands = 0 : i64, tpu.core_type = #tpu.core_type<tc>, window_params = [{transform_indices = @transform_0, window_bounds = array<i64: 8, 5>}, {transform_indices = @transform_1, window_bounds = array<i64: 2, 128>}, {transform_indices = @transform_2, window_bounds = array<i64: 8, 128>}]} {
    %c0 = arith.constant 0 : index
    %c0_0 = arith.constant 0 : index
    %0 = vector.load %arg2[%c0, %c0_0] : memref<8x5xf32, #tpu.memory_space<vmem>>, vector<8x1xf32>
    %c0_1 = arith.constant 0 : index
    %c1 = arith.constant 1 : index
    %1 = vector.load %arg2[%c0_1, %c1] : memref<8x5xf32, #tpu.memory_space<vmem>>, vector<8x1xf32>
    %c0_2 = arith.constant 0 : index
    %c2 = arith.constant 2 : index
    %2 = vector.load %arg2[%c0_2, %c2] : memref<8x5xf32, #tpu.memory_space<vmem>>, vector<8x1xf32>
    %c0_3 = arith.constant 0 : index
    %c3 = arith.constant 3 : index
    %3 = vector.load %arg2[%c0_3, %c3] : memref<8x5xf32, #tpu.memory_space<vmem>>, vector<8x1xf32>
    %c0_4 = arith.constant 0 : index
    %c4 = arith.constant 4 : index
    %4 = vector.load %arg2[%c0_4, %c4] : memref<8x5xf32, #tpu.memory_space<vmem>>, vector<8x1xf32>
    %c0_5 = arith.constant 0 : index
    %c0_6 = arith.constant 0 : index
    %5 = vector.load %arg3[%c0_5, %c0_6] : memref<2x128xf32, #tpu.memory_space<vmem>>, vector<1x128xf32>
    %c1_7 = arith.constant 1 : index
    %c0_8 = arith.constant 0 : index
    %6 = vector.load %arg3[%c1_7, %c0_8] : memref<2x128xf32, #tpu.memory_space<vmem>>, vector<1x128xf32>
    %7 = vector.broadcast %2 : vector<8x1xf32> to vector<8x128xf32>
    %8 = vector.broadcast %5 : vector<1x128xf32> to vector<8x128xf32>
    %9 = arith.mulf %7, %8 : vector<8x128xf32>
    %10 = vector.broadcast %3 : vector<8x1xf32> to vector<8x128xf32>
    %11 = vector.broadcast %6 : vector<1x128xf32> to vector<8x128xf32>
    %12 = arith.mulf %10, %11 : vector<8x128xf32>
    %13 = arith.addf %9, %12 : vector<8x128xf32>
    %14 = vector.broadcast %4 : vector<8x1xf32> to vector<8x128xf32>
    %15 = arith.addf %13, %14 : vector<8x128xf32>
    %16 = math.exp %15 : vector<8x128xf32>
    %17 = vector.broadcast %1 : vector<8x1xf32> to vector<8x128xf32>
    %18 = arith.mulf %17, %16 : vector<8x128xf32>
    %19 = vector.broadcast %0 : vector<8x1xf32> to vector<8x128xf32>
    %20 = arith.addf %19, %18 : vector<8x128xf32>
    %c0_9 = arith.constant 0 : index
    %c0_10 = arith.constant 0 : index
    %21 = vector.load %arg4[%c0_9, %c0_10] : memref<8x128xf32, #tpu.memory_space<vmem>>, vector<8x128xf32>
    tpu.vector_store %arg4[%c0_9, %c0_10], %20 {strides = array<i32>} : memref<8x128xf32, #tpu.memory_space<vmem>>, vector<8x128xf32>,
    return
  }
  func.func @transform_0(%arg0: i32, %arg1: i32) -> (i32, i32) {
    %c0_i32 = arith.constant 0 : i32
    %c0_i32_0 = arith.constant 0 : i32
    return %arg0, %c0_i32 : i32, i32
  }
  func.func @transform_1(%arg0: i32, %arg1: i32) -> (i32, i32) {
    %c0_i32 = arith.constant 0 : i32
    %c0_i32_0 = arith.constant 0 : i32
    return %c0_i32, %arg1 : i32, i32
  }
  func.func @transform_2(%arg0: i32, %arg1: i32) -> (i32, i32) {
    %c0_i32 = arith.constant 0 : i32
    return %arg0, %arg1 : i32, i32
  }
}

</mosaic_0001>

<bundles_post_ra>
// kernel: tpu_custom_call.1
= control target key start
LH: loop header
LB: loop body
LE: loop exit
PB: predicated region body
PF: predicated region fallthrough
CT: control target
= control target key end

     0   :  { %7 = vsyncpa [#allocation3], 0  ;;  %s221_s0 = inlined_call_operand.hbm [shape: f32[8,5], index: 0, kind: input, shape index: {}]   ;;  %s222_s1 = inlined_call_operand.hbm [shape: f32[2,128], index: 1, kind: input, shape index: {}]   ;;  %s223_s2 = inlined_call_operand.hbm [shape: f32[8,128], index: 2, kind: output, shape index: {}]  }
   0x1   :  { %8 = vsyncpa [#allocation6], 0 }
   0x2   :  { %9 = vsyncpa [#allocation4], 0  ;;  %s15_s11 = sshll.u32 %s221_s0, 4  ;;  %s189_s12 = smov [#allocation2]   ;;  %s16_s11 = int_to_ptr.hbm [resolvable:$true] %s15_s11 }
   0x3   :  { %s17_s13 = sshll.u32 %s189_s12, 4  ;;  %s26_s16 = sshll.u32 %s222_s1, 4  ;;  %s18_s13 = int_to_ptr.vmem [resolvable:$true] %s17_s13  ;;  %s27_s16 = int_to_ptr.hbm [resolvable:$true] %s26_s16 }
   0x4   :  { %20 = dma.hbm_to_vmem [thread:$0]  %s16_s11, 128, %s18_s13, [#allocation3]  }
   0x5   :  { %s190_s17 = smov [#allocation5]  }
   0x6   :  { %s28_s18 = sshll.u32 %s190_s17, 4  ;;  %s29_s18 = int_to_ptr.vmem [resolvable:$true] %s28_s18 }
   0x7   :  { %31 = dma.hbm_to_vmem [thread:$0]  %s27_s16, 32, %s29_s18, [#allocation6]  }
   0x8   :  { %183 = dma.done.wait [#allocation3], 128  }
   0x9   :  { %184 = vsyncadd [#allocation3], 4294967168 }
   0xa   :  { %185 = dma.done.wait [#allocation6], 32  }
   0xb   :  { %186 = vsyncadd [#allocation6], 4294967264  ;;  %v191_v0 = vmov 2   ;;  %v192_v1 = vmov 4   ;;  %v193_v2 = vmov 0   ;;  %v40_v3 = vld [vmem:[#allocation2] sm:$0xff] }
   0xc   :  { %101 = vset.pattern.permute.xlu0 %v191_v0  ;;  %103 = vset.pattern.permute.xlu1 %v192_v1  ;;  %v194_v4 = vmov 3   ;;  %v195_v5 = vmov 1   ;;  %v107_v7 = vld [vmem:[#allocation5] ss:$0 sm:$0xff]  ;;  %v108_v8 = vld [vmem:[#allocation5 + $0x1] ss:$0 sm:$0xff] }
   0xd   :  { %105 = vset.pattern.permute.xlu2 %v193_v2  ;;  %45 = vperm.xlu0 %101, %v40_v3   ;;  %s196_s0 = smov [#allocation7]   ;;  %s82_s21 = sshll.u32 %s223_s2, 4  ;;  %s83_s21 = int_to_ptr.hbm [resolvable:$true] %s82_s21 }
   0xe   :  { %58 = vperm.xlu1 %103, %v40_v3   ;;  %70 = vperm.xlu2 %105, %v40_v3   ;;  %s80_s1 = sshll.u32 %s196_s0, 4  ;;  %s81_s1 = int_to_ptr.vmem [resolvable:$true] %s80_s1 }
  0x15   :  { %102 = vset.pattern.permute.xlu0 %v194_v4 }
  0x16   :  { %104 = vset.pattern.permute.xlu1 %v195_v5  ;;  %51 = vperm.xlu0 %102, %v40_v3  }
  0x17   :  { %65 = vperm.xlu1 %104, %v40_v3  }
  0x1e   :  { %106 = vset.pattern.permute.xlu0 %v193_v2 }
  0x68   :  { %v71_v18 = vpop.permute.xlu2 %70 }
  0x7f   :  { %v46_v6 = vpop.permute.xlu0 %45 }
  0x80   :  { %v49_v10 = vmul.f32 %v107_v7, %v46_v6  ;;  %v59_v12 = vpop.permute.xlu1 %58 }
  0x88   :  { %v52_v9 = vpop.permute.xlu0 %51 }
  0x89   :  { %v55_v11 = vmul.f32 %v108_v8, %v52_v9  ;;  %v66_v16 = vpop.permute.xlu1 %65 }
  0x8b   :  { %v56_v13 = vadd.f32 %v55_v11, %v49_v10 }
  0x8d   :  { %v61_v14 = vadd.f32 %v59_v12, %v56_v13 }
  0x8f   :  { %v62_v15 = vmul.f32 1.442695, %v61_v14 }
  0x91   :  { %109 = vpow2.f32 %v62_v15 }
  0x97   :  { %v110_v17 = vpop.eup %109 }
  0x98   :  { %v68_v19 = vmul.f32 %v110_v17, %v66_v16 }
  0x9a   :  { %v73_v20 = vadd.f32 %v71_v18, %v68_v19 }
  0x9c   :  { %74 = vst [vmem:[#allocation7] sm:$0xff] %v73_v20 }
  0x9d   :  { %85 = dma.vmem_to_hbm [thread:$0]  %s81_s1, 128, %s83_s21, [#allocation4]  }
  0x9e   :  { %187 = dma.done.wait [#allocation4], 128  }
  0x9f   :  { %188 = vsyncadd [#allocation4], 4294967168 }
  0xa0   :  { %90 = vsyncpa [#allocation3], 1 }
  0xa1   :  { %91 = vsyncpa [#allocation6], 1 }
  0xa2   :  { %92 = vsyncpa [#allocation4], 1 }

</bundles_post_ra>
